<compile_context>
chip_gen: v5e
topology: v5e:2x2
jax: 0.10.0
libtpu: 0.0.40
codegen_flags: <defaults>
</compile_context>

<pallas_src>
import functools

import jax
import jax.numpy as jnp
from jax.experimental import pallas as pl
from jax.experimental.pallas import tpu as pltpu


def _round_up(x, m):
    return ((x + m - 1) // m) * m


def _vmem_cap_bytes():
    try:
        return int(pltpu.get_tpu_info().vmem_capacity_bytes * 3 // 4)
    except Exception:
        return 48 << 20   # safe on v5e / v6e / v7x


# Below this many MACs, plain XLA beats Pallas launch + padding overhead.
_SMALL_PROBLEM_MACS = 1 << 20


# ----------------------------------------------------------------------------
# Pallas kernels
# ----------------------------------------------------------------------------
def _matmul_bias_kernel(x_ref, m_ref, b_ref, o_ref):
    # Whole-K tile: single MXU pass per (i, j) block, no accumulator state.
    o_ref[...] = (
        jnp.dot(x_ref[...], m_ref[...], preferred_element_type=jnp.float32)
        + b_ref[...]
    ).astype(o_ref.dtype)


def _matmul_bias_acc_kernel(x_ref, m_ref, b_ref, o_ref, acc_ref):
    # Fallback for very large K: K-tiled streaming accumulation.
    @pl.when(pl.program_id(2) == 0)
    def _():
        acc_ref[...] = jnp.zeros_like(acc_ref)

    acc_ref[...] += jnp.dot(
        x_ref[...], m_ref[...], preferred_element_type=jnp.float32
    )

    @pl.when(pl.program_id(2) == pl.num_programs(2) - 1)
    def _():
        o_ref[...] = (acc_ref[...] + b_ref[...]).astype(o_ref.dtype)


# ----------------------------------------------------------------------------
# Wrapper: out = inp @ m_p[:K, :n_out] + b_p[:, :n_out]
#   m_p (Kp, Np) and b_p (1, Np) are pre-padded (multiples of 128) in __init__.
# ----------------------------------------------------------------------------
@functools.partial(jax.jit, static_argnames=("n_out",))
def _affine_pallas(inp, m_p, b_p, *, n_out):
    B, K = inp.shape
    Kp, Np = m_p.shape

    # Tiny-problem fast path (e.g. B=8, F=32): plain XLA is strictly faster.
    if B * K * Np < _SMALL_PROBLEM_MACS:
        out = inp @ m_p[:K, :n_out] + b_p[:, :n_out]
        return out.astype(inp.dtype)

    itemsize = jnp.dtype(inp.dtype).itemsize

    # ---- tile selection ------------------------------------------------
    Bp = _round_up(B, 8)
    if Bp >= 1024:
        tm = 512
    elif Bp >= 256:
        tm = 128          # >= 2 batch blocks -> megacore sharding on v7x
    else:
        tm = Bp           # single block (already a multiple of 8)
    Bp = _round_up(Bp, tm)

    # Keep the whole weight resident across batch tiles when affordable.
    if 2 * Kp * Np * 4 <= (24 << 20):
        tn = Np
    elif Np % 512 == 0:
        tn = 512
    elif Np % 256 == 0:
        tn = 256
    else:
        tn = 128

    # ---- pad x only when not already aligned -----------------------------
    if (Bp, Kp) != (B, K):
        x_p = jnp.pad(inp, ((0, Bp - B), (0, Kp - K)))
    else:
        x_p = inp

    vmem_cap = _vmem_cap_bytes()

    # Collapsed-K working set (double-buffered blocks).
    collapsed_bytes = (
        2 * tm * Kp * itemsize      # x
        + 2 * Kp * tn * 4           # weight
        + 2 * tm * tn * itemsize    # out
        + 2 * tn * 4                # bias
    )
    use_collapsed_k = collapsed_bytes + (4 << 20) <= vmem_cap

    cost = pl.CostEstimate(
        flops=2 * Bp * Kp * Np,
        transcendentals=0,
        bytes_accessed=itemsize * (Bp * Kp + Bp * Np) + 4 * (Kp * Np + Np),
    )

    if use_collapsed_k:
        vmem_limit = min(max(collapsed_bytes + (4 << 20), 16 << 20), vmem_cap)
        out_p = pl.pallas_call(
            _matmul_bias_kernel,
            out_shape=jax.ShapeDtypeStruct((Bp, Np), inp.dtype),
            grid_spec=pltpu.PrefetchScalarGridSpec(
                num_scalar_prefetch=0,
                grid=(Bp // tm, Np // tn),
                in_specs=[
                    pl.BlockSpec((tm, Kp), lambda i, j: (i, 0)),   # x tile
                    pl.BlockSpec((Kp, tn), lambda i, j: (0, j)),   # weight (resident)
                    pl.BlockSpec((1, tn), lambda i, j: (0, j)),    # bias tile
                ],
                out_specs=pl.BlockSpec((tm, tn), lambda i, j: (i, j)),
            ),
            compiler_params=pltpu.CompilerParams(
                dimension_semantics=("parallel", "parallel"),
                vmem_limit_bytes=vmem_limit,
            ),
            cost_estimate=cost,
        )(x_p, m_p, b_p)
    else:
        # Very large K: stream K with an f32 VMEM accumulator.
        tk = 512 if Kp % 512 == 0 else 256 if Kp % 256 == 0 else 128
        tiled_bytes = (
            2 * tm * tk * itemsize + 2 * tk * tn * 4
            + 2 * tm * tn * itemsize + tm * tn * 4 + 2 * tn * 4
        )
        vmem_limit = min(max(tiled_bytes + (4 << 20), 16 << 20), vmem_cap)
        out_p = pl.pallas_call(
            _matmul_bias_acc_kernel,
            out_shape=jax.ShapeDtypeStruct((Bp, Np), inp.dtype),
            grid_spec=pltpu.PrefetchScalarGridSpec(
                num_scalar_prefetch=0,
                grid=(Bp // tm, Np // tn, Kp // tk),
                in_specs=[
                    pl.BlockSpec((tm, tk), lambda i, j, k: (i, k)),
                    pl.BlockSpec((tk, tn), lambda i, j, k: (k, j)),
                    pl.BlockSpec((1, tn), lambda i, j, k: (0, j)),
                ],
                out_specs=pl.BlockSpec((tm, tn), lambda i, j, k: (i, j)),
                scratch_shapes=[pltpu.VMEM((tm, tn), jnp.float32)],
            ),
            compiler_params=pltpu.CompilerParams(
                dimension_semantics=("parallel", "parallel", "arbitrary"),
                vmem_limit_bytes=vmem_limit,
            ),
            cost_estimate=cost,
        )(x_p, m_p, b_p)

    if (Bp, Np) != (B, n_out):
        out_p = out_p[:B, :n_out]
    return out_p


# ----------------------------------------------------------------------------
# Transform classes (JAX/Pallas re-implementation of the PyTorch originals)
# ----------------------------------------------------------------------------
class InverseNotAvailable(Exception):
    """Exception to be thrown when a transform does not have an inverse."""
    pass


class Transform:
    """Base class for all transform objects."""

    def forward(self, inputs, context=None):
        raise NotImplementedError()

    def inverse(self, inputs, context=None):
        raise InverseNotAvailable()

    def __call__(self, inputs, context=None):
        return self.forward(inputs, context)


class AffineLinearTransform(Transform):
    """Concrete invertible transform used to exercise `InverseTransform`."""

    def __init__(self, weight, bias):
        weight = jnp.asarray(weight, jnp.float32)            # (F, F)
        bias = jnp.asarray(bias, jnp.float32)                # (F,)
        F = weight.shape[0]
        weight_inv = jnp.linalg.inv(weight)                  # glue: param setup

        w_t = weight.T                                       # forward operand
        w_inv_t = weight_inv.T                               # inverse operand
        bias_fwd = bias.reshape(1, -1)
        # Fold the pre-shift into the output bias: (y - b) @ W^{-T} = y @ W^{-T} + (-b @ W^{-T})
        bias_inv = (-bias_fwd) @ w_inv_t

        # Pre-pad to lane-dense shapes once, at construction (not per call).
        Fp = _round_up(F, 128)
        pad_w = ((0, Fp - F), (0, Fp - F))
        pad_b = ((0, 0), (0, Fp - F))
        self.w_t_p = jnp.pad(w_t, pad_w)
        self.w_inv_t_p = jnp.pad(w_inv_t, pad_w)
        self.bias_fwd_p = jnp.pad(bias_fwd, pad_b)
        self.bias_inv_p = jnp.pad(bias_inv, pad_b)
        self.n_features = F

        self.logabsdet = float(jnp.linalg.slogdet(weight)[1])

    def forward(self, inputs, context=None):
        out = _affine_pallas(inputs, self.w_t_p, self.bias_fwd_p,
                             n_out=self.n_features)
        lad = jnp.full((inputs.shape[0],), self.logabsdet, jnp.float32)
        return out, lad

    def inverse(self, inputs, context=None):
        out = _affine_pallas(inputs, self.w_inv_t_p, self.bias_inv_p,
                             n_out=self.n_features)
        lad = jnp.full((inputs.shape[0],), -self.logabsdet, jnp.float32)
        return out, lad


class InverseTransform(Transform):
    """Creates a transform that is the inverse of a given transform."""

    def __init__(self, transform):
        super().__init__()
        self._transform = transform

    def forward(self, inputs, context=None):
        return self._transform.inverse(inputs, context)

    def inverse(self, inputs, context=None):
        return self._transform(inputs, context)


# ----------------------------------------------------------------------------
if __name__ == "__main__":
    key = jax.random.PRNGKey(0)
    k_w, k_b, k_x = jax.random.split(key, 3)

    # Lane-aligned shapes large enough to take the Pallas path.
    B, F = 256, 128
    W = jax.random.normal(k_w, (F, F), jnp.float32) * 0.05 + jnp.eye(F, dtype=jnp.float32)
    b = jax.random.normal(k_b, (F,), jnp.float32)
    x = jax.random.normal(k_x, (B, F), jnp.float32)

    inner = AffineLinearTransform(W, b)
    inv_transform = InverseTransform(inner)

    # InverseTransform.forward == inner.inverse  (Pallas kernel hot path)
    out, logabsdet = inv_transform.forward(x)
    out = jax.block_until_ready(out)
    logabsdet = jax.block_until_ready(logabsdet)

    # Reference check in plain JAX.
    ref_out = (x - b) @ jnp.linalg.inv(W).T
    ref_lad = -jnp.linalg.slogdet(W)[1] * jnp.ones((B,), jnp.float32)
    assert out.shape == (B, F) and logabsdet.shape == (B,)
    assert jnp.allclose(out, ref_out, atol=1e-2, rtol=1e-2)
    assert jnp.allclose(logabsdet, ref_lad, atol=1e-4, rtol=1e-4)

    # Round-trip through the wrapper: inverse(forward(x)) == x.
    y, _ = inv_transform.inverse(x)       # == inner.forward(x)
    x_rec, _ = inv_transform.forward(y)   # == inner.inverse(y)
    assert jnp.allclose(jax.block_until_ready(x_rec), x, atol=1e-2, rtol=1e-2)

    # Small-shape fast path (B=8, F=32) still matches the reference.
    Bs, Fs = 8, 32
    Ws = jax.random.normal(k_w, (Fs, Fs), jnp.float32) * 0.1 + jnp.eye(Fs, dtype=jnp.float32)
    bs = jax.random.normal(k_b, (Fs,), jnp.float32)
    xs = jax.random.normal(k_x, (Bs, Fs), jnp.float32)
    small = InverseTransform(AffineLinearTransform(Ws, bs))
    out_s, _ = small.forward(xs)
    ref_s = (xs - bs) @ jnp.linalg.inv(Ws).T
    assert jnp.allclose(jax.block_until_ready(out_s), ref_s, atol=1e-3, rtol=1e-3)

    print("KERNEL_OK")
</pallas_src>

<mosaic_0001>
module attributes {stable_mosaic.version = 11 : i64} {
  func.func @_matmul_bias_kernel(%arg0: i32, %arg1: i32, %arg2: memref<128x128xf32, #tpu.memory_space<vmem>>, %arg3: memref<128x128xf32, #tpu.memory_space<vmem>>, %arg4: memref<1x128xf32, #tpu.memory_space<vmem>>, %arg5: memref<128x128xf32, #tpu.memory_space<vmem>>) attributes {dimension_semantics = [#tpu.dimension_semantics<parallel>, #tpu.dimension_semantics<parallel>], iteration_bounds = array<i64: 2, 1>, scalar_prefetch = 0 : i64, scratch_operands = 0 : i64, tpu.core_type = #tpu.core_type<tc>, window_params = [{transform_indices = @transform_0, window_bounds = array<i64: 128, 128>}, {transform_indices = @transform_1, window_bounds = array<i64: 128, 128>}, {transform_indices = @transform_2, window_bounds = array<i64: 1, 128>}, {transform_indices = @transform_3, window_bounds = array<i64: 128, 128>}]} {
    %c0 = arith.constant 0 : index
    %c0_0 = arith.constant 0 : index
    %0 = vector.load %arg2[%c0, %c0_0] : memref<128x128xf32, #tpu.memory_space<vmem>>, vector<128x128xf32>
    %c0_1 = arith.constant 0 : index
    %c0_2 = arith.constant 0 : index
    %1 = vector.load %arg3[%c0_1, %c0_2] : memref<128x128xf32, #tpu.memory_space<vmem>>, vector<128x128xf32>
    %cst = arith.constant dense<0.000000e+00> : vector<128x128xf32>
    %2 = tpu.matmul %0, %1, %cst {dimension_numbers = #tpu.dot_dimension_numbers<[1], [0], [0], [1], [0, 0, 1, 1], [], []>} : vector<128x128xf32>, vector<128x128xf32>, vector<128x128xf32> -> vector<128x128xf32>
    %c0_3 = arith.constant 0 : index
    %c0_4 = arith.constant 0 : index
    %3 = vector.load %arg4[%c0_3, %c0_4] : memref<1x128xf32, #tpu.memory_space<vmem>>, vector<1x128xf32>
    %4 = vector.broadcast %3 : vector<1x128xf32> to vector<128x128xf32>
    %5 = arith.addf %2, %4 : vector<128x128xf32>
    %c0_5 = arith.constant 0 : index
    %c0_6 = arith.constant 0 : index
    %6 = vector.load %arg5[%c0_5, %c0_6] : memref<128x128xf32, #tpu.memory_space<vmem>>, vector<128x128xf32>
    tpu.vector_store %arg5[%c0_5, %c0_6], %5 {strides = array<i32>} : memref<128x128xf32, #tpu.memory_space<vmem>>, vector<128x128xf32>,
    return
  }
  func.func @transform_0(%arg0: i32, %arg1: i32) -> (i32, i32) {
    %c0_i32 = arith.constant 0 : i32
    %c0_i32_0 = arith.constant 0 : i32
    return %arg0, %c0_i32 : i32, i32
  }
  func.func @transform_1(%arg0: i32, %arg1: i32) -> (i32, i32) {
    %c0_i32 = arith.constant 0 : i32
    %c0_i32_0 = arith.constant 0 : i32
    return %c0_i32, %arg1 : i32, i32
  }
  func.func @transform_2(%arg0: i32, %arg1: i32) -> (i32, i32) {
    %c0_i32 = arith.constant 0 : i32
    %c0_i32_0 = arith.constant 0 : i32
    return %c0_i32, %arg1 : i32, i32
  }
  func.func @transform_3(%arg0: i32, %arg1: i32) -> (i32, i32) {
    %c0_i32 = arith.constant 0 : i32
    return %arg0, %arg1 : i32, i32
  }
}

</mosaic_0001>

<bundles_post_ra>
// kernel: _affine_pallas.1
= control target key start
LH: loop header
LB: loop body
LE: loop exit
PB: predicated region body
PF: predicated region fallthrough
CT: control target
= control target key end

     0   :  { %s1004_s0 = inlined_call_operand.hbm [shape: f32[256,128], index: 0, kind: input, shape index: {}]   ;;  %s1005_s1 = inlined_call_operand.hbm [shape: f32[128,128], index: 1, kind: input, shape index: {}]   ;;  %s1006_s2 = inlined_call_operand.vmem [shape: f32[1,128], index: 2, kind: input, shape index: {}]   ;;  %s1007_s3 = inlined_call_operand.hbm [shape: f32[256,128], index: 3, kind: output, shape index: {}]  }
   0x1   :  { %1009 = sst [smem:[#allocation11_spill]] %s1005_s1 }
   0x2   :  { %8 = vsyncpa [#allocation3], 0 }
   0x3   :  { %10 = vsyncpa [#allocation3 + $0x1], 0 }
   0x4   :  { %11 = vsyncpa [#allocation6], 0 }
   0x5   :  { %12 = vsyncpa [#allocation4], 0 }
   0x6   :  { %14 = vsyncpa [#allocation4 + $0x1], 0  ;;  %s805_s12 = smov 0   ;;  %s807_s13 = smov 0  }
   0x7   :  { %s809_s14 = smov 0   ;;  %s811_s15 = smov 0  }
   0x8   :  { %s813_s16 = smov 0   ;;  %s815_s17 = smov 0  }
   0x9 LB: > { %s486_s18 = sadd.s32 4294967295, %s778_s17   ;;  %s487_s19 = sadd.s32 4294967294, %s778_s17   ;;  %s778_s17 = sphi %s815_s17, %s20_s17   ;;  %s774_s16 = sphi %s813_s16, %s1023_s16   ;;  %s770_s15 = sphi %s811_s15, %s1022_s15   ;;  %s766_s14 = sphi %s809_s14, %s1021_s14   ;;  %s762_s13 = sphi %s807_s13, %s1020_s13   ;;  %s758_s12 = sphi %s805_s12, %s1019_s12  }
   0xa   : > { %p52_p0 = scmp.ne.s32.totalorder %s762_s13, %s758_s12  ;;  %p839_p1 = scmp.eq.s32.totalorder %s486_s18, 0 }
   0xb   : > { %p843_p2 = scmp.eq.s32.totalorder %s486_s18, 1  ;;  %p136_p3 = scmp.eq.s32.totalorder %s487_s19, 1 }
   0xc   : > { %p849_p4 = por %p839_p1, %p52_p0  ;;  %p488_p5 = scmp.ge.s32.totalorder %s778_s17, 1 }
   0xd   : > { %p854_p6 = por %p136_p3, %p52_p0  ;;  %p143_p7 = scmp.lt.s32.totalorder %s778_s17, 3 }
   0xe   : > { %s1014_s1 = sld [smem:[#allocation11_spill]]  ;;  %s780_s28 = smov [#allocation5]  }
   0xf   : > { %p862_p8 = pnand %p488_p5, %p143_p7  ;;  %s158_s29 = sshll.u32 %s780_s28, 4  ;;  %s159_s29 = int_to_ptr.vmem [resolvable:$true] %s158_s29 }
  0x10   : > { %p491_p11 = scmp.ge.s32.totalorder %s778_s17, 2  ;;  %s1008_s30 = smov 128  }
  0x11   : > { %p562_p9 = pneg %p862_p8  ;;  %s782_s4 = smov 8  }
  0x12   : > { %s32_s5 = sadd.s32 1, %s774_s16  ;;  %s39_s6 = sadd.s32 1, %s766_s14 }
  0x13   : > { %p563_p10 = pnand %p562_p9, %p839_p1  ;;  %p34_p12 = scmp.ge.s32.totalorder %s32_s5, 2 }
  0x14   : > { %s156_s26 = sshll.u32 %s1014_s1, 4  ;;  %p46_p13 = scmp.ne.s32.totalorder %s766_s14, %s762_s13  ;;  %s157_s26 = int_to_ptr.hbm [resolvable:$true] %s156_s26 }
  0x15   : > { %565 = dma.hbm_to_vmem [thread:$0]  (!%p563_p10), %s157_s26, 2048, %s159_s29, [#allocation6], %s1008_s30, %s1008_s30, %s782_s4  }
  0x16   : > { %p47_p0 = scmp.eq.s32.totalorder %s778_s17, 0  ;;  %s1025_s5 = smov (%p34_p12, %s32_s5), 0 }
  0x17   : > { %p887_p5 = por %p843_p2, %p46_p13  ;;  %s36_s9 = ssub.s32 %s774_s16, %s1025_s5 }
  0x18   : > { %p881_p3 = por %p47_p0, %p46_p13  ;;  %p575_p7 = scmp.lt.s32.totalorder %s778_s17, 2 }
  0x19   : > { %p37_p9 = scmp.eq.s32.totalorder %s36_s9, 0  ;;  %s178_s10 = sand.u32 1, %s766_s14  }
  0x1a   : > { %s492_s11 = sshll.u32 %s178_s10, 7  ;;  %s504_s19 = sshll.u32 %s774_s16, 7 }
  0x1b   : > { %s896_s18 = scalar_select %p37_p9, %s766_s14, %s39_s6  }
  0x1c   : > { %s187_s26 = scalar_lea.hbm %s1004_s0, %s504_s19  ;;  %s182_s28 = scalar_lea.vmem [#allocation2], %s492_s11 }
  0x1d   : > { %s190_s29 = sshll.u32 %s182_s28, 4  ;;  %s188_s21 = sshll.u32 %s187_s26, 4  ;;  %s191_s29 = int_to_ptr.vmem [resolvable:$true] %s190_s29  ;;  %s189_s21 = int_to_ptr.hbm [resolvable:$true] %s188_s21 }
  0x1e   : > { %p567_p2 = pnand %p575_p7, %p881_p3  ;;  %s179_s30 = scalar_lea.sflag [#allocation3], %s178_s10 }
  0x1f   : > { %s1018_s1 = smov 128   ;;  %202 = sbr.rel (%p862_p8) target bundleno = 234 (0xea), region = 32 }
  0x20   : > { %569 = dma.hbm_to_vmem [thread:$0]  (!%p567_p2), %s189_s21, 2048, %s191_s29, %s179_s30, %s1018_s1, %s1018_s1, %s782_s4  }
  0x21   : > { %s910_s6 = sand.u32 (!%p862_p8), 1, %s762_s13  }
  0x22   : > { %s496_s9 = sshll.u32 (!%p862_p8), %s910_s6, 7  ;;  %s205_s11 = scalar_lea.sflag (!%p862_p8), [#allocation3], %s910_s6 }
  0x23   : > { %s916_s7 = scalar_lea.vmem (!%p862_p8), [#allocation2], %s496_s9 }
  0x24   : > { %745 = dma.done.wait (%p849_p4), %s205_s11, 2048  }
  0x25   : > { %747 = vsyncadd (%p849_p4), %s205_s11, 4294965248 }
  0x26   : > { %749 = dma.done.wait (%p839_p1), [#allocation6], 2048  }
  0x27   : > { %751 = vsyncadd (%p839_p1), [#allocation6], 4294965248  ;;  %v276_v0 = vld [vmem:[#allocation5 + $0x78] sm:$0xff]  ;;  %v275_v1 = vld [vmem:[#allocation5 + $0x70] sm:$0xff]  ;;  %s947_s22 = scalar_lea.vmem [#allocation7], %s496_s9  ;;  %s505_s27 = sshll.u32 %s770_s15, 7 }
  0x28   : > { %507 = vmatpush.msra.mxu2 %v276_v0  ;;  %508 = vmatpush.msra.mxu3 %v276_v0  ;;  %v274_v2 = vld [vmem:[#allocation5 + $0x68] sm:$0xff]  ;;  %v273_v3 = vld [vmem:[#allocation5 + $0x60] sm:$0xff]  ;;  %v272_v4 = vld [vmem:[#allocation5 + $0x58] sm:$0xff]  ;;  %s375_s10 = scalar_lea.hbm %s1007_s3, %s505_s27  ;;  %s376_s19 = sshll.u32 %s947_s22, 4  ;;  %s377_s19 = int_to_ptr.vmem [resolvable:$true] %s376_s19 }
  0x29   : > { %281 = vmatpush.msra.mxu0 %v276_v0  ;;  %506 = vmatpush.msra.mxu1 %v276_v0  ;;  %v271_v5 = vld [vmem:[#allocation5 + $0x50] sm:$0xff]  ;;  %v270_v6 = vld [vmem:[#allocation5 + $0x48] sm:$0xff]  ;;  %v269_v7 = vld [vmem:[#allocation5 + $0x40] sm:$0xff]  ;;  %s378_s24 = sshll.u32 %s375_s10, 4  ;;  %s363_s15 = scalar_lea.sflag [#allocation4], %s910_s6  ;;  %s379_s24 = int_to_ptr.hbm [resolvable:$true] %s378_s24 }
  0x2a   : > { %510 = vmatpush.msra.mxu2 %v275_v1  ;;  %511 = vmatpush.msra.mxu3 %v275_v1  ;;  %v268_v8 = vld [vmem:[#allocation5 + $0x38] sm:$0xff]  ;;  %v267_v9 = vld [vmem:[#allocation5 + $0x30] sm:$0xff]  ;;  %v266_v10 = vld [vmem:[#allocation5 + $0x28] sm:$0xff]  ;;  %s706_s25 = sshra.s32 %s379_s24, 4  ;;  %s712_s21 = scalar_lea.hbm %s1007_s3, 256  ;;  %s707_s25 = int_to_ptr.hbm [resolvable:$true] %s706_s25 }
  0x2b   : > { %282 = vmatpush.msra.mxu0 %v275_v1  ;;  %509 = vmatpush.msra.mxu1 %v275_v1  ;;  %v265_v11 = vld [vmem:[#allocation5 + $0x20] sm:$0xff]  ;;  %v264_v12 = vld [vmem:[#allocation5 + $0x18] sm:$0xff]  ;;  %v263_v13 = vld [vmem:[#allocation5 + $0x10] sm:$0xff]  ;;  %s708_s26 = scalar_lea.hbm %s707_s25, 128  ;;  %p713_p10 = scmp.lt.s32.totalorder %s707_s25, %s1007_s3 }
  0x2c   : > { %513 = vmatpush.msra.mxu2 %v274_v2  ;;  %514 = vmatpush.msra.mxu3 %v274_v2  ;;  %v262_v14 = vld [vmem:[#allocation5 + $0x8] sm:$0xff]  ;;  %v261_v15 = vld [vmem:[#allocation5] sm:$0xff]  ;;  %v255_v24 = vld [vmem:[%s916_s7 + $0x50] sm:$0xff]  ;;  %p709_p1 = scmp.ne.s32.totalorder %s707_s25, %s708_s26  ;;  %p714_p12 = scmp.lt.s32.totalorder %s712_s21, %s708_s26 }
  0x2d   : > { %283 = vmatpush.msra.mxu0 %v274_v2  ;;  %512 = vmatpush.msra.mxu1 %v274_v2  ;;  %v253_v16 = vld [vmem:[%s916_s7 + $0x40] sm:$0xff]  ;;  %v254_v20 = vld [vmem:[%s916_s7 + $0x48] sm:$0xff]  ;;  %v259_v25 = vld [vmem:[%s916_s7 + $0x70] sm:$0xff] }
  0x2e   : > { %516 = vmatpush.msra.mxu2 %v273_v3  ;;  %517 = vmatpush.msra.mxu3 %v273_v3  ;;  %v257_v17 = vld [vmem:[%s916_s7 + $0x60] sm:$0xff]  ;;  %v258_v21 = vld [vmem:[%s916_s7 + $0x68] sm:$0xff]  ;;  %v247_v26 = vld [vmem:[%s916_s7 + $0x10] sm:$0xff]  ;;  %p710_p4 = pnand %p709_p1, %p887_p5  ;;  %p715_p13 = por %p714_p12, %p713_p10 }
  0x2f   : > { %284 = vmatpush.msra.mxu0 %v273_v3  ;;  %515 = vmatpush.msra.mxu1 %v273_v3  ;;  %v245_v18 = vld [vmem:[%s916_s7] sm:$0xff]  ;;  %v246_v22 = vld [vmem:[%s916_s7 + $0x8] sm:$0xff]  ;;  %v251_v27 = vld [vmem:[%s916_s7 + $0x30] sm:$0xff] }
  0x30   : > { %519 = vmatpush.msra.mxu2 %v272_v4  ;;  %520 = vmatpush.msra.mxu3 %v272_v4  ;;  %v249_v19 = vld [vmem:[%s916_s7 + $0x20] sm:$0xff]  ;;  %v250_v23 = vld [vmem:[%s916_s7 + $0x28] sm:$0xff]  ;;  %v256_v28 = vld [vmem:[%s916_s7 + $0x58] sm:$0xff]  ;;  %p711_p8 = pneg %p710_p4 }
  0x31   : > { %285 = vmatpush.msra.mxu0 %v272_v4  ;;  %518 = vmatpush.msra.mxu1 %v272_v4  ;;  %v260_v29 = vld [vmem:[%s916_s7 + $0x78] sm:$0xff]  ;;  %v631_v32 = vld [vmem:[%s1006_s2] ss:$0 sm:$0xff] }
  0x32   : > { %522 = vmatpush.msra.mxu2 %v271_v5  ;;  %523 = vmatpush.msra.mxu3 %v271_v5  ;;  %v248_v30 = vld [vmem:[%s916_s7 + $0x18] sm:$0xff]  ;;  %p716_p0 = pnand %p715_p13, %p711_p8 }
  0x33   : > { %286 = vmatpush.msra.mxu0 %v271_v5  ;;  %521 = vmatpush.msra.mxu1 %v271_v5  ;;  %v252_v31 = vld [vmem:[%s916_s7 + $0x38] sm:$0xff] }
  0x34   : > { %525 = vmatpush.msra.mxu2 %v270_v6  ;;  %526 = vmatpush.msra.mxu3 %v270_v6 }
  0x35   : > { %287 = vmatpush.msra.mxu0 %v270_v6  ;;  %524 = vmatpush.msra.mxu1 %v270_v6 }
  0x36   : > { %528 = vmatpush.msra.mxu2 %v269_v7  ;;  %529 = vmatpush.msra.mxu3 %v269_v7 }
  0x37   : > { %288 = vmatpush.msra.mxu0 %v269_v7  ;;  %527 = vmatpush.msra.mxu1 %v269_v7 }
  0x38   : > { %531 = vmatpush.msra.mxu2 %v268_v8  ;;  %532 = vmatpush.msra.mxu3 %v268_v8 }
  0x39   : > { %289 = vmatpush.msra.mxu0 %v268_v8  ;;  %530 = vmatpush.msra.mxu1 %v268_v8 }
  0x3a   : > { %534 = vmatpush.msra.mxu2 %v267_v9  ;;  %535 = vmatpush.msra.mxu3 %v267_v9 }
  0x3b   : > { %290 = vmatpush.msra.mxu0 %v267_v9  ;;  %533 = vmatpush.msra.mxu1 %v267_v9 }
  0x3c   : > { %537 = vmatpush.msra.mxu2 %v266_v10  ;;  %538 = vmatpush.msra.mxu3 %v266_v10 }
  0x3d   : > { %291 = vmatpush.msra.mxu0 %v266_v10  ;;  %536 = vmatpush.msra.mxu1 %v266_v10 }
  0x3e   : > { %540 = vmatpush.msra.mxu2 %v265_v11  ;;  %541 = vmatpush.msra.mxu3 %v265_v11 }
  0x3f   : > { %292 = vmatpush.msra.mxu0 %v265_v11  ;;  %539 = vmatpush.msra.mxu1 %v265_v11 }
  0x40   : > { %543 = vmatpush.msra.mxu2 %v264_v12  ;;  %544 = vmatpush.msra.mxu3 %v264_v12 }
  0x41   : > { %293 = vmatpush.msra.mxu0 %v264_v12  ;;  %542 = vmatpush.msra.mxu1 %v264_v12 }
  0x42   : > { %546 = vmatpush.msra.mxu2 %v263_v13  ;;  %547 = vmatpush.msra.mxu3 %v263_v13 }
  0x43   : > { %294 = vmatpush.msra.mxu0 %v263_v13  ;;  %545 = vmatpush.msra.mxu1 %v263_v13 }
  0x44   : > { %549 = vmatpush.msra.mxu2 %v262_v14  ;;  %550 = vmatpush.msra.mxu3 %v262_v14 }
  0x45   : > { %295 = vmatpush.msra.mxu0 %v262_v14  ;;  %548 = vmatpush.msra.mxu1 %v262_v14 }
  0x46   : > { %552 = vmatpush.msra.mxu2 %v261_v15  ;;  %553 = vmatpush.msra.mxu3 %v261_v15 }
  0x47   : > { %321 = vmatmul.f32.vlgmr.msra.gmra.mxu2 %v253_v16  ;;  %333 = vmatmul.f32.vlgmr.msra.gmra.mxu3 %v257_v17 }
  0x48   : > { %296 = vmatpush.msra.mxu0 %v261_v15  ;;  %551 = vmatpush.msra.mxu1 %v261_v15 }
  0x49   : > { %297 = vmatmul.f32.vlgmr.msra.gmra.mxu0 %v245_v18  ;;  %309 = vmatmul.f32.vlgmr.msra.gmra.mxu1 %v249_v19 }
  0x4f   : > { %324 = vmatmul.f32.gmra.mxu2 %v254_v20  ;;  %336 = vmatmul.f32.gmra.mxu3 %v258_v21 }
  0x51   : > { %300 = vmatmul.f32.gmra.mxu0 %v246_v22  ;;  %312 = vmatmul.f32.gmra.mxu1 %v250_v23 }
  0x57   : > { %327 = vmatmul.f32.gmra.mxu2 %v255_v24  ;;  %339 = vmatmul.f32.gmra.mxu3 %v259_v25 }
  0x59   : > { %303 = vmatmul.f32.gmra.mxu0 %v247_v26  ;;  %315 = vmatmul.f32.gmra.mxu1 %v251_v27 }
  0x5f   : > { %330 = vmatmul.f32.gmra.mxu2 %v256_v28  ;;  %342 = vmatmul.f32.gmra.mxu3 %v260_v29 }
  0x61   : > { %306 = vmatmul.f32.gmra.mxu0 %v248_v30  ;;  %318 = vmatmul.f32.gmra.mxu1 %v252_v31 }
  0xc6   : > { %v298_v33 = vpop.f32.mrf.mxu0  ;;  %v310_v34 = vpop.f32.mrf.mxu1 }
  0xc7   : > { %v299_v35 = vadd.f32 %v631_v32, %v298_v33  ;;  %v311_v36 = vadd.f32 %v631_v32, %v310_v34 }
  0xc9   : > { %346 = vst [vmem:[%s947_s22] sm:$0xff] %v299_v35 }
  0xca   : > { %350 = vst [vmem:[%s947_s22 + $0x20] sm:$0xff] %v311_v36  ;;  %v322_v37 = vpop.f32.mrf.mxu2  ;;  %v334_v38 = vpop.f32.mrf.mxu3 }
  0xcb   : > { %v323_v39 = vadd.f32 %v631_v32, %v322_v37  ;;  %v335_v40 = vadd.f32 %v631_v32, %v334_v38 }
  0xcd   : > { %354 = vst [vmem:[%s947_s22 + $0x40] sm:$0xff] %v323_v39 }
  0xce   : > { %358 = vst [vmem:[%s947_s22 + $0x60] sm:$0xff] %v335_v40  ;;  %v301_v41 = vpop.f32.mrf.mxu0  ;;  %v313_v42 = vpop.f32.mrf.mxu1 }
  0xcf   : > { %v302_v43 = vadd.f32 %v631_v32, %v301_v41  ;;  %v314_v44 = vadd.f32 %v631_v32, %v313_v42 }
  0xd1   : > { %347 = vst [vmem:[%s947_s22 + $0x8] sm:$0xff] %v302_v43 }
  0xd2   : > { %351 = vst [vmem:[%s947_s22 + $0x28] sm:$0xff] %v314_v44  ;;  %v325_v45 = vpop.f32.mrf.mxu2  ;;  %v337_v46 = vpop.f32.mrf.mxu3 }
  0xd3   : > { %v326_v47 = vadd.f32 %v631_v32, %v325_v45  ;;  %v338_v48 = vadd.f32 %v631_v32, %v337_v46 }
  0xd5   : > { %355 = vst [vmem:[%s947_s22 + $0x48] sm:$0xff] %v326_v47 }
  0xd6   : > { %359 = vst [vmem:[%s947_s22 + $0x68] sm:$0xff] %v338_v48  ;;  %v304_v49 = vpop.f32.mrf.mxu0  ;;  %v316_v50 = vpop.f32.mrf.mxu1 }
  0xd7   : > { %v305_v51 = vadd.f32 %v631_v32, %v304_v49  ;;  %v317_v52 = vadd.f32 %v631_v32, %v316_v50 }
  0xd9   : > { %348 = vst [vmem:[%s947_s22 + $0x10] sm:$0xff] %v305_v51 }
  0xda   : > { %352 = vst [vmem:[%s947_s22 + $0x30] sm:$0xff] %v317_v52  ;;  %v328_v53 = vpop.f32.mrf.mxu2  ;;  %v340_v54 = vpop.f32.mrf.mxu3 }
  0xdb   : > { %v329_v55 = vadd.f32 %v631_v32, %v328_v53  ;;  %v341_v56 = vadd.f32 %v631_v32, %v340_v54 }
  0xdd   : > { %356 = vst [vmem:[%s947_s22 + $0x50] sm:$0xff] %v329_v55 }
  0xde   : > { %360 = vst [vmem:[%s947_s22 + $0x70] sm:$0xff] %v341_v56  ;;  %v307_v57 = vpop.f32.mrf.mxu0  ;;  %v319_v58 = vpop.f32.mrf.mxu1 }
  0xdf   : > { %v308_v59 = vadd.f32 %v631_v32, %v307_v57  ;;  %v320_v60 = vadd.f32 %v631_v32, %v319_v58 }
  0xe1   : > { %349 = vst [vmem:[%s947_s22 + $0x18] sm:$0xff] %v308_v59 }
  0xe2   : > { %353 = vst [vmem:[%s947_s22 + $0x38] sm:$0xff] %v320_v60  ;;  %v331_v61 = vpop.f32.mrf.mxu2  ;;  %v343_v62 = vpop.f32.mrf.mxu3 }
  0xe3   : > { %v332_v63 = vadd.f32 %v631_v32, %v331_v61  ;;  %v344_v0 = vadd.f32 %v631_v32, %v343_v62 }
  0xe5   : > { %357 = vst [vmem:[%s947_s22 + $0x58] sm:$0xff] %v332_v63 }
  0xe6   : > { %361 = vst [vmem:[%s947_s22 + $0x78] sm:$0xff] %v344_v0 }
  0xe7   : > { %719 = shalt.err (!%p716_p0)
}
  0xe8   : > { %s783_s6 = smov 128   ;;  %s784_s7 = smov 8  }
  0xe9   : > { %560 = dma.vmem_to_hbm [thread:$0]  (%p887_p5), %s377_s19, 2048, %s379_s24, %s363_s15, %s783_s6, %s783_s6, %s784_s7  }
  0xea PF: > { %s393_s1 = sand.u32 1, %s758_s12   ;;  %p571_p3 = pnand %p491_p11, %p854_p6 }
  0xeb   : > { %s394_s20 = scalar_lea.sflag [#allocation4], %s393_s1 }
  0xec   : > { %p572_p7 = pneg %p571_p3 }
  0xee   : > { %753 = dma.done.wait (%p572_p7), %s394_s20, 2048  }
  0xef   : > { %755 = vsyncadd (%p572_p7), %s394_s20, 4294965248  ;;  %s20_s17 = sadd.s32 1, %s778_s17   ;;  %s1019_s12 = smov %s762_s13 }
  0xf0   : > { %p17_p9 = scmp.ge.s32.totalorder %s20_s17, 4   ;;  %s1020_s13 = smov %s766_s14 }
  0xf1   : > { %s1021_s14 = smov %s896_s18  ;;  %s1022_s15 = smov %s774_s16 }
  0xf2   : > { %s1023_s16 = smov %s1025_s5  ;;  %19 = sbr.rel (!%p17_p9) target bundleno = 9 (0x9), region = 85 }
  0xf7   :  { %400 = vsyncpa [#allocation3], 1 }
  0xf8   :  { %402 = vsyncpa [#allocation3 + $0x1], 1 }
  0xf9   :  { %403 = vsyncpa [#allocation6], 1 }
  0xfa   :  { %404 = vsyncpa [#allocation4], 1 }
  0xfb   :  { %406 = vsyncpa [#allocation4 + $0x1], 1 }

</bundles_post_ra>
